<compile_context>
chip_gen: v7x
topology: tpu7x:2x2x1
jax: 0.10.0
libtpu: 0.0.40
codegen_flags: <defaults>
</compile_context>

<pallas_src>
import math

import jax
import jax.numpy as jnp
from jax.experimental import pallas as pl
from jax.experimental.pallas import tpu as pltpu

_LANE = 128
_MAX_TN = 2048                         # lane-tile width for very wide feature dims
_TARGET_TILE_BYTES = 2 * 1024 * 1024   # per x tile -> ~8 MiB double-buffered in+out
_SMALL_FALLBACK_BYTES = 256 * 1024


def _ia3_kernel(x_ref, g_ref, o_ref):
    # x_ref: (tm, tn) tile of tokens, g_ref: (1, tn) gamma row, o_ref: (tm, tn)
    o_ref[...] = x_ref[...] * g_ref[...]


def _round_up(n, m):
    return ((n + m - 1) // m) * m


def ia3(x, gamma, *, tm=None, small_fallback=True):
    """Per-channel scaling: out = gamma * x.

    x:     (..., planes)
    gamma: (1, planes) or (planes,)
    """
    orig_shape = x.shape
    planes = orig_shape[-1]
    gamma_row = gamma.reshape(1, planes).astype(x.dtype)

    m = int(math.prod(orig_shape[:-1]))
    itemsize = jnp.dtype(x.dtype).itemsize

    # Tiny inputs: kernel-launch / pipeline-prologue overhead dominates; XLA's
    # fused broadcast-multiply is already at roofline there.
    if small_fallback and m * planes * itemsize < _SMALL_FALLBACK_BYTES:
        return (gamma_row * x.reshape(m, planes)).reshape(orig_shape)

    x2d = x.reshape(m, planes)

    # Lane-dense layout with zero data movement:
    #  - planes < 128 dividing 128: fold k rows into one 128-wide row (pure
    #    contiguous reshape, free) and tile gamma k times,
    #  - otherwise keep planes as-is (full-dim block exception; only the tail
    #    lanes of a non-128 width pay a masked vst).
    m_rows, lane = m, planes
    g_row = gamma_row
    if planes < _LANE and _LANE % planes == 0:
        k = _LANE // planes
        if m % k == 0:
            m_rows, lane = m // k, planes * k
            x2d = x2d.reshape(m_rows, lane)
            g_row = jnp.tile(gamma_row, (1, k))

    # Lane tiling only for very wide feature dims (bounds VMEM regardless of planes).
    if lane % _LANE == 0 and lane > _MAX_TN:
        tn = _MAX_TN
    else:
        tn = lane

    # dtype-aware sublane multiple (8 for f32, 16 for bf16, 32 for int8/fp8).
    sublane = max(8, 32 // itemsize)

    # Row tile sized by bytes, capped by the (sublane-rounded) row count.
    tm_cap = _round_up(m_rows, sublane)
    if tm is None:
        tm_eff = max(sublane,
                     (_TARGET_TILE_BYTES // (tn * itemsize)) // sublane * sublane)
    else:
        tm_eff = _round_up(int(tm), sublane)
    tm_eff = min(tm_eff, tm_cap)

    grid = (pl.cdiv(m_rows, tm_eff), pl.cdiv(lane, tn))

    # Real HBM traffic (no wrapper pads/slices).
    cost = pl.CostEstimate(
        flops=m * planes,
        transcendentals=0,
        bytes_accessed=(2 * m * planes + planes) * itemsize,
    )

    # Double-buffered x + out tiles, resident gamma row, headroom.
    vmem_needed = (2 * 2 * tm_eff * tn + 2 * tn) * itemsize + (1 << 20)
    compiler_kwargs = dict(dimension_semantics=("parallel", "parallel"))
    if vmem_needed > 16 * 1024 * 1024:  # below this, every generation's default fits
        try:
            vmem_phys = int(pltpu.get_tpu_info().vmem_capacity_bytes)
        except Exception:
            vmem_phys = 64 * 1024 * 1024  # conservative: v7x per-TensorCore
        compiler_kwargs["vmem_limit_bytes"] = int(
            min(vmem_needed, max(32 * 1024 * 1024, 3 * vmem_phys // 4))
        )

    out2d = pl.pallas_call(
        _ia3_kernel,
        out_shape=jax.ShapeDtypeStruct((m_rows, lane), x.dtype),
        grid_spec=pltpu.PrefetchScalarGridSpec(
            num_scalar_prefetch=0,
            grid=grid,
            in_specs=[
                pl.BlockSpec((tm_eff, tn), lambda i, j: (i, j)),  # x tile
                pl.BlockSpec((1, tn), lambda i, j: (0, j)),       # gamma row (resident)
            ],
            out_specs=pl.BlockSpec((tm_eff, tn), lambda i, j: (i, j)),
        ),
        compiler_params=pltpu.CompilerParams(**compiler_kwargs),
        cost_estimate=cost,
    )(x2d, g_row)

    return out2d.reshape(orig_shape)


if __name__ == "__main__":
    key = jax.random.PRNGKey(0)
    kx1, kx2, kx3, kg = jax.random.split(key, 4)

    def check(x, gamma, **kw):
        out = jax.block_until_ready(ia3(x, gamma, **kw))
        ref = gamma * x  # (1, planes) broadcasts over leading dims
        assert out.shape == x.shape
        assert jnp.allclose(out, ref, atol=1e-6, rtol=1e-6), "mismatch vs reference"

    planes = 64
    # PyTorch module initializes gamma to ones; perturb so the check is non-trivial.
    gamma = 1.0 + 0.1 * jax.random.normal(kg, (1, planes), jnp.float32)

    # 1) Module-sized input through the Pallas path (row-fold -> 128-lane rows).
    x1 = jax.random.normal(kx1, (2, 8, planes), jnp.float32)
    check(x1, gamma, small_fallback=False)

    # 2) Non-tile-aligned rows with a small explicit tm: exercises the partial
    #    trailing row block handled in-kernel (no wrapper pad/slice).
    x2 = jax.random.normal(kx2, (2, 9, planes), jnp.float32)
    check(x2, gamma, tm=8, small_fallback=False)

    # 3) planes not a multiple of 128: full-dim lane block (masked tail stores).
    planes3 = 192
    gamma3 = 1.0 + 0.1 * jax.random.normal(kg, (1, planes3), jnp.float32)
    x3 = jax.random.normal(kx3, (3, 8, planes3), jnp.float32)
    check(x3, gamma3, small_fallback=False)

    # 4) Tiny-input fallback path (plain JAX broadcast-multiply).
    check(x1, gamma)

    print("KERNEL_OK")
</pallas_src>

<mosaic_0001>
module attributes {stable_mosaic.version = 11 : i64} {
  func.func @_ia3_kernel(%arg0: i32, %arg1: i32, %arg2: memref<8x128xf32, #tpu.memory_space<vmem>>, %arg3: memref<1x128xf32, #tpu.memory_space<vmem>>, %arg4: memref<8x128xf32, #tpu.memory_space<vmem>>) attributes {dimension_semantics = [#tpu.dimension_semantics<parallel>, #tpu.dimension_semantics<parallel>], iteration_bounds = array<i64: 1, 1>, scalar_prefetch = 0 : i64, scratch_operands = 0 : i64, tpu.core_type = #tpu.core_type<tc>, window_params = [{transform_indices = @transform_0, window_bounds = array<i64: 8, 128>}, {transform_indices = @transform_1, window_bounds = array<i64: 1, 128>}, {transform_indices = @transform_2, window_bounds = array<i64: 8, 128>}]} {
    %c0 = arith.constant 0 : index
    %c0_0 = arith.constant 0 : index
    %0 = vector.load %arg2[%c0, %c0_0] : memref<8x128xf32, #tpu.memory_space<vmem>>, vector<8x128xf32>
    %c0_1 = arith.constant 0 : index
    %c0_2 = arith.constant 0 : index
    %1 = vector.load %arg3[%c0_1, %c0_2] : memref<1x128xf32, #tpu.memory_space<vmem>>, vector<1x128xf32>
    %2 = vector.broadcast %1 : vector<1x128xf32> to vector<8x128xf32>
    %3 = arith.mulf %0, %2 : vector<8x128xf32>
    %c0_3 = arith.constant 0 : index
    %c0_4 = arith.constant 0 : index
    %4 = vector.load %arg4[%c0_3, %c0_4] : memref<8x128xf32, #tpu.memory_space<vmem>>, vector<8x128xf32>
    tpu.vector_store %arg4[%c0_3, %c0_4], %3 {strides = array<i32>} : memref<8x128xf32, #tpu.memory_space<vmem>>, vector<8x128xf32>,
    return
  }
  func.func @transform_0(%arg0: i32, %arg1: i32) -> (i32, i32) {
    %c0_i32 = arith.constant 0 : i32
    return %arg0, %arg1 : i32, i32
  }
  func.func @transform_1(%arg0: i32, %arg1: i32) -> (i32, i32) {
    %c0_i32 = arith.constant 0 : i32
    %c0_i32_0 = arith.constant 0 : i32
    return %c0_i32, %arg1 : i32, i32
  }
  func.func @transform_2(%arg0: i32, %arg1: i32) -> (i32, i32) {
    %c0_i32 = arith.constant 0 : i32
    return %arg0, %arg1 : i32, i32
  }
}

</mosaic_0001>

<bundles_post_ra>
// kernel: tpu_custom_call.1
= control target key start
LH: loop header
LB: loop body
LE: loop exit
PB: predicated region body
PF: predicated region fallthrough
CT: control target
= control target key end

     0   :  { %7 = vsyncpa [#allocation3], 0  ;;  %s144_s0 = inlined_call_operand.hbm [shape: f32[8,128], index: 0, kind: input, shape index: {}]   ;;  %s145_s1 = inlined_call_operand.vmem [shape: f32[1,128], index: 1, kind: input, shape index: {}]   ;;  %s146_s2 = inlined_call_operand.hbm [shape: f32[8,128], index: 2, kind: output, shape index: {}]  }
   0x1   :  { %8 = vsyncpa [#allocation4], 0  ;;  %s100_s9 = smov [#allocation2]   ;;  %s52_s13 = scalar_lea.hbm %s144_s0, 128 }
   0x2   :  { %s15_s10 = sshll.u32 %s100_s9, 4  ;;  %p53_p0 = scmp.ne.s32.totalorder %s144_s0, %s52_s13  ;;  %s16_s10 = int_to_ptr.vmem [resolvable:$true] %s15_s10 }
   0x3   :  { %p56_p1 = scmp.lt.u32.totalorder %s52_s13, %s144_s0 }
   0x5   :  { %p58_p2 = pnand %p56_p1, %p53_p0 }
   0x7   :  { %61 = shalt.err (!%p58_p2)
}
   0x8   :  { %s62_s18 = scalar_lea.vmem %s16_s10, 128  ;;  %p67_p4 = scmp.lt.s32.totalorder %s16_s10, %s16_s10 }
   0x9   :  { %p63_p3 = scmp.ne.s32.totalorder %s16_s10, %s62_s18  ;;  %p68_p5 = scmp.lt.s32.totalorder %s62_s18, %s62_s18 }
   0xb   :  { %p69_p6 = por %p68_p5, %p67_p4 }
   0xd   :  { %p70_p7 = pnand %p69_p6, %p63_p3 }
   0xf   :  { %73 = shalt.err (!%p70_p7)
}
  0x10   :  { %18 = dma.hbm_to_vmem [thread:$0]  %s144_s0, 128, %s16_s10, [#allocation3]  }
  0x11   :  { %96 = dma.done.wait [#allocation3], 128  }
  0x12   :  { %97 = vsyncadd [#allocation3], 4294967168  ;;  %s101_s21 = smov [#allocation5]   ;;  %v24_v0 = vld [vmem:[#allocation2] sm:$0xff] }
  0x13   :  { %s40_s22 = sshll.u32 %s101_s21, 4  ;;  %v49_v1 = vld [vmem:[%s145_s1] ss:$0 sm:$0xff]  ;;  %s41_s22 = int_to_ptr.vmem [resolvable:$true] %s40_s22 }
  0x14   :  { %v32_v2 = vmul.f32 %v49_v1, %v24_v0  ;;  %s74_s25 = scalar_lea.vmem %s41_s22, 128  ;;  %p79_p9 = scmp.lt.s32.totalorder %s41_s22, %s41_s22 }
  0x15   :  { %p75_p8 = scmp.ne.s32.totalorder %s41_s22, %s74_s25  ;;  %p80_p10 = scmp.lt.s32.totalorder %s74_s25, %s74_s25 }
  0x16   :  { %33 = vst [vmem:[#allocation5] sm:$0xff] %v32_v2 }
  0x17   :  { %p81_p11 = por %p80_p10, %p79_p9 }
  0x19   :  { %p82_p12 = pnand %p81_p11, %p75_p8 }
  0x1b   :  { %85 = shalt.err (!%p82_p12)
}
  0x1c   :  { %s86_s27 = scalar_lea.hbm %s146_s2, 128 }
  0x1d   :  { %p87_p13 = scmp.ne.s32.totalorder %s146_s2, %s86_s27  ;;  %p90_p0 = scmp.lt.u32.totalorder %s86_s27, %s146_s2 }
  0x1f   :  { %p92_p1 = pnand %p90_p0, %p87_p13 }
  0x21   :  { %95 = shalt.err (!%p92_p1)
}
  0x22   :  { %43 = dma.vmem_to_hbm [thread:$0]  %s41_s22, 128, %s146_s2, [#allocation4]  }
  0x23   :  { %98 = dma.done.wait [#allocation4], 128  }
  0x24   :  { %99 = vsyncadd [#allocation4], 4294967168 }
  0x25   :  { %47 = vsyncpa [#allocation3], 1 }
  0x26   :  { %48 = vsyncpa [#allocation4], 1 }

</bundles_post_ra>
